<compile_context>
chip_gen: v5e
topology: v5e:2x2
jax: 0.10.0
libtpu: 0.0.40
codegen_flags: <defaults>
</compile_context>

<pallas_src>
import math

import jax
import jax.numpy as jnp
from jax.experimental import pallas as pl
from jax.experimental.pallas import tpu as pltpu


_SMALL_N = 1 << 16                 # below this, a fused jnp op beats launch/reshape overhead
_LANE_CHOICES = (1024, 512, 256, 128)
_TARGET_BLOCK_BYTES = 2 << 20      # ~2 MiB/stream/buffer -> 3 streams x 2 bufs = 12 MiB,
                                   # fits v5e's 16 MiB scoped-VMEM default (v6e/v7x: 32 MiB).


def _round_up(x: int, m: int) -> int:
    return ((x + m - 1) // m) * m


def _margin_contrastive_kernel(scalars_ref, pos_ref, neg_ref, out_ref):
    # scalars_ref: (2,) f32 in SMEM = [margin, normalizer]; divide on the scalar path.
    margin = scalars_ref[0] / scalars_ref[1]
    diff = pos_ref[...].astype(jnp.float32) - neg_ref[...].astype(jnp.float32) + margin
    out_ref[...] = jnp.maximum(diff, 0.0).astype(out_ref.dtype)


class MarginContrastiveLoss:
    """JAX/Pallas port of pytorch_gleam MarginContrastiveLoss."""

    def __init__(self, margin: float):
        self.margin = margin

    def forward(self, pos_scores, neg_scores, normalizer=None):
        pos_scores = jnp.asarray(pos_scores)
        neg_scores = jnp.asarray(neg_scores)
        out_dtype = jnp.result_type(pos_scores.dtype, neg_scores.dtype)

        norm = 1.0 if normalizer is None else normalizer
        norm = jnp.asarray(norm, jnp.float32).reshape(())
        margin_f32 = jnp.asarray(self.margin, jnp.float32) / norm

        orig_shape = pos_scores.shape
        n = math.prod(orig_shape)

        # Fallback: mismatched (broadcastable) shapes or tiny inputs -> one fused XLA
        # elementwise op; a standalone pallas_call would be pure overhead here.
        if pos_scores.shape != neg_scores.shape or n < _SMALL_N:
            diff = (pos_scores.astype(jnp.float32)
                    - neg_scores.astype(jnp.float32) + margin_f32)
            return jnp.maximum(diff, 0.0).astype(out_dtype)

        scalars = jnp.stack([jnp.asarray(self.margin, jnp.float32), norm])

        # Pick a lane width dividing n so no input padding / output slicing is needed.
        lanes = next((l for l in _LANE_CHOICES if n % l == 0), None)
        flat_pos = pos_scores.reshape(-1)
        flat_neg = neg_scores.reshape(-1)
        trailing = 0
        if lanes is None:
            # TODO(synk): rare ragged-n path still pads <128 elements (one extra copy per
            # stream); an in-kernel masked tail store would remove even that.
            lanes = 128
            trailing = _round_up(n, lanes) - n
            flat_pos = jnp.pad(flat_pos, (0, trailing))
            flat_neg = jnp.pad(flat_neg, (0, trailing))
        rows = (n + trailing) // lanes
        pos2d = flat_pos.reshape(rows, lanes)
        neg2d = flat_neg.reshape(rows, lanes)

        # Sublane alignment: 8 * packing of the narrowest dtype among the three streams.
        itemsizes = [jnp.dtype(pos_scores.dtype).itemsize,
                     jnp.dtype(neg_scores.dtype).itemsize,
                     jnp.dtype(out_dtype).itemsize]
        row_align = 8 * max(1, 4 // min(itemsizes))
        max_item = max(itemsizes)

        # Largest block at/under the ~2 MiB roofline plateau, aligned to row_align.
        cap_rows = max(
            row_align,
            (_TARGET_BLOCK_BYTES // (lanes * max_item)) // row_align * row_align,
        )
        block_rows = min(cap_rows, rows)
        if block_rows == rows and rows >= 2 * row_align:
            # >=2 grid blocks so v7x megacore can stream on both TensorCores.
            block_rows = _round_up(pl.cdiv(rows, 2), row_align)
        num_blocks = pl.cdiv(rows, block_rows)   # final block may be partial

        out2d = pl.pallas_call(
            _margin_contrastive_kernel,
            out_shape=jax.ShapeDtypeStruct((rows, lanes), out_dtype),
            grid=(num_blocks,),
            in_specs=[
                pl.BlockSpec(memory_space=pltpu.MemorySpace.SMEM),      # [margin, norm]
                pl.BlockSpec((block_rows, lanes), lambda i: (i, 0)),    # pos
                pl.BlockSpec((block_rows, lanes), lambda i: (i, 0)),    # neg
            ],
            out_specs=pl.BlockSpec((block_rows, lanes), lambda i: (i, 0)),
            compiler_params=pltpu.CompilerParams(
                dimension_semantics=("parallel",),
            ),
        )(scalars, pos2d, neg2d)

        out_flat = out2d.reshape(-1)
        if trailing:
            out_flat = out_flat[:n]
        return out_flat.reshape(orig_shape)

    # From ContrastiveLoss base + MarginContrastiveLoss override: concat + negate.
    # Pure glue -> plain JAX.
    def calculate_scores(self, pos_scores, neg_scores=None):
        if neg_scores is None:
            scores = pos_scores
        else:
            scores = jnp.concatenate([pos_scores, neg_scores], axis=0)
        return -scores


if __name__ == "__main__":
    key = jax.random.PRNGKey(0)
    keys = jax.random.split(key, 10)
    loss_mod = MarginContrastiveLoss(margin=1.0)

    # 1) tiny f32 batch (jnp fallback path), with and without normalizer
    batch = 8
    pos = jax.random.normal(keys[0], (batch,), dtype=jnp.float32)
    neg = jax.random.normal(keys[1], (batch,), dtype=jnp.float32)
    loss = jax.block_until_ready(loss_mod.forward(pos, neg))
    loss_n = jax.block_until_ready(loss_mod.forward(pos, neg, normalizer=2.0))
    assert loss.shape == (batch,) and loss.dtype == jnp.float32
    assert jnp.allclose(loss, jnp.maximum(pos - neg + 1.0, 0.0), atol=1e-6)
    assert jnp.allclose(loss_n, jnp.maximum(pos - neg + 0.5, 0.0), atol=1e-6)

    # 2) non-aligned small n (fallback path)
    n_small = 1000
    p2 = jax.random.normal(keys[2], (n_small,), dtype=jnp.float32)
    n2 = jax.random.normal(keys[3], (n_small,), dtype=jnp.float32)
    l2 = jax.block_until_ready(loss_mod.forward(p2, n2, normalizer=4.0))
    assert jnp.allclose(l2, jnp.maximum(p2 - n2 + 0.25, 0.0), atol=1e-6)

    # 3) kernel path, f32, lane-divisible, 2-D input shape (2 grid blocks)
    p3 = jax.random.normal(keys[4], (96, 1024), dtype=jnp.float32)
    n3 = jax.random.normal(keys[5], (96, 1024), dtype=jnp.float32)
    l3 = jax.block_until_ready(loss_mod.forward(p3, n3, normalizer=2.0))
    assert l3.shape == (96, 1024) and l3.dtype == jnp.float32
    assert jnp.allclose(l3, jnp.maximum(p3 - n3 + 0.5, 0.0), atol=1e-6)

    # 4) kernel path, bf16 end-to-end (kernel upcasts in-vreg)
    p4 = jax.random.normal(keys[6], (128, 1024), dtype=jnp.float32).astype(jnp.bfloat16)
    n4 = jax.random.normal(keys[7], (128, 1024), dtype=jnp.float32).astype(jnp.bfloat16)
    l4 = jax.block_until_ready(loss_mod.forward(p4, n4))
    ref4 = jnp.maximum(p4.astype(jnp.float32) - n4.astype(jnp.float32) + 1.0, 0.0)
    assert l4.dtype == jnp.bfloat16
    assert jnp.allclose(l4.astype(jnp.float32), ref4, atol=2e-2)

    # 5) kernel path, ragged n (not a multiple of 128): tiny pad + partial final block
    nr = 98311
    p5 = jax.random.normal(keys[8], (nr,), dtype=jnp.float32)
    n5 = jax.random.normal(keys[9], (nr,), dtype=jnp.float32)
    l5 = jax.block_until_ready(loss_mod.forward(p5, n5))
    assert l5.shape == (nr,)
    assert jnp.allclose(l5, jnp.maximum(p5 - n5 + 1.0, 0.0), atol=1e-6)

    # 6) mixed dtype (f32 pos, bf16 neg) -> f32 output via result_type promotion
    n6 = n3.astype(jnp.bfloat16)
    l6 = jax.block_until_ready(loss_mod.forward(p3, n6))
    ref6 = jnp.maximum(p3 - n6.astype(jnp.float32) + 1.0, 0.0)
    assert l6.dtype == jnp.float32
    assert jnp.allclose(l6, ref6, atol=1e-6)

    # 7) calculate_scores sanity (plain JAX glue)
    sc = jax.block_until_ready(loss_mod.calculate_scores(pos, neg))
    assert sc.shape == (2 * batch,)

    print("KERNEL_OK")
</pallas_src>

<mosaic_0001>
module attributes {stable_mosaic.version = 11 : i64} {
  func.func @_margin_contrastive_kernel(%arg0: i32, %arg1: memref<2xf32, #tpu.memory_space<smem>>, %arg2: memref<48x1024xf32, #tpu.memory_space<vmem>>, %arg3: memref<48x1024xf32, #tpu.memory_space<vmem>>, %arg4: memref<48x1024xf32, #tpu.memory_space<vmem>>) attributes {dimension_semantics = [#tpu.dimension_semantics<parallel>], iteration_bounds = array<i64: 2>, scalar_prefetch = 0 : i64, scratch_operands = 0 : i64, tpu.core_type = #tpu.core_type<tc>, window_params = [{transform_indices = @transform_0, window_bounds = array<i64: 2>}, {transform_indices = @transform_1, window_bounds = array<i64: 48, 1024>}, {transform_indices = @transform_2, window_bounds = array<i64: 48, 1024>}, {transform_indices = @transform_3, window_bounds = array<i64: 48, 1024>}]} {
    %c0 = arith.constant 0 : index
    %0 = memref.load %arg1[%c0] : memref<2xf32, #tpu.memory_space<smem>>
    %c1 = arith.constant 1 : index
    %1 = memref.load %arg1[%c1] : memref<2xf32, #tpu.memory_space<smem>>
    %2 = arith.divf %0, %1 : f32
    %c0_0 = arith.constant 0 : index
    %c0_1 = arith.constant 0 : index
    %3 = vector.load %arg2[%c0_0, %c0_1] : memref<48x1024xf32, #tpu.memory_space<vmem>>, vector<48x1024xf32>
    %c0_2 = arith.constant 0 : index
    %c0_3 = arith.constant 0 : index
    %4 = vector.load %arg3[%c0_2, %c0_3] : memref<48x1024xf32, #tpu.memory_space<vmem>>, vector<48x1024xf32>
    %5 = arith.subf %3, %4 : vector<48x1024xf32>
    %6 = vector.broadcast %2 : f32 to vector<48x1024xf32>
    %7 = arith.addf %5, %6 : vector<48x1024xf32>
    %cst = arith.constant 0.000000e+00 : f32
    %8 = vector.broadcast %cst : f32 to vector<48x1024xf32>
    %9 = arith.maximumf %7, %8 : vector<48x1024xf32>
    %c0_4 = arith.constant 0 : index
    %c0_5 = arith.constant 0 : index
    %10 = vector.load %arg4[%c0_4, %c0_5] : memref<48x1024xf32, #tpu.memory_space<vmem>>, vector<48x1024xf32>
    tpu.vector_store %arg4[%c0_4, %c0_5], %9 {strides = array<i32>} : memref<48x1024xf32, #tpu.memory_space<vmem>>, vector<48x1024xf32>,
    return
  }
  func.func @transform_0(%arg0: i32) -> i32 {
    %c0_i32 = arith.constant 0 : i32
    %c0_i32_0 = arith.constant 0 : i32
    return %c0_i32 : i32
  }
  func.func @transform_1(%arg0: i32) -> (i32, i32) {
    %c0_i32 = arith.constant 0 : i32
    %c0_i32_0 = arith.constant 0 : i32
    return %arg0, %c0_i32 : i32, i32
  }
  func.func @transform_2(%arg0: i32) -> (i32, i32) {
    %c0_i32 = arith.constant 0 : i32
    %c0_i32_0 = arith.constant 0 : i32
    return %arg0, %c0_i32 : i32, i32
  }
  func.func @transform_3(%arg0: i32) -> (i32, i32) {
    %c0_i32 = arith.constant 0 : i32
    %c0_i32_0 = arith.constant 0 : i32
    return %arg0, %c0_i32 : i32, i32
  }
}

</mosaic_0001>

<bundles_post_ra>
// kernel: tpu_custom_call.1
= control target key start
LH: loop header
LB: loop body
LE: loop exit
PB: predicated region body
PF: predicated region fallthrough
CT: control target
= control target key end

     0   :  { %s1337_s0 = inlined_call_operand.hbm [shape: f32[2], index: 0, kind: input, shape index: {}]   ;;  %s1338_s1 = inlined_call_operand.hbm [shape: f32[96,1024], index: 1, kind: input, shape index: {}]   ;;  %s1339_s2 = inlined_call_operand.hbm [shape: f32[96,1024], index: 2, kind: input, shape index: {}]   ;;  %s1340_s3 = inlined_call_operand.hbm [shape: f32[96,1024], index: 3, kind: output, shape index: {}]  }
   0x1   :  { %1342 = sst [smem:[#allocation15_spill]] %s1337_s0 }
   0x2   :  { %8 = vsyncpa [#allocation5], 0 }
   0x3   :  { %9 = vsyncpa [#allocation3], 0 }
   0x4   :  { %11 = vsyncpa [#allocation3 + $0x1], 0 }
   0x5   :  { %12 = vsyncpa [#allocation8], 0 }
   0x6   :  { %14 = vsyncpa [#allocation8 + $0x1], 0 }
   0x7   :  { %15 = vsyncpa [#allocation4], 0 }
   0x8   :  { %17 = vsyncpa [#allocation4 + $0x1], 0  ;;  %s958_s12 = smov 0   ;;  %s960_s13 = smov 0  }
   0x9   :  { %s962_s14 = smov 0   ;;  %s964_s15 = smov 0  }
   0xa LB: > { %s979_s16 = sadd.s32 4294967295, %s931_s15   ;;  %s685_s17 = sadd.s32 4294967294, %s931_s15   ;;  %s931_s15 = sphi %s964_s15, %s1357_s15   ;;  %s927_s14 = sphi %s962_s14, %s1356_s14   ;;  %s923_s13 = sphi %s960_s13, %s1355_s13   ;;  %s919_s12 = sphi %s958_s12, %s1354_s12  }
   0xb   : > { %s983_s18 = sadd.s32 1, %s931_s15   ;;  %s51_s19 = sadd.s32 1, %s927_s14 }
   0xc   : > { %s48_s20 = ssub.s32 %s931_s15, %s983_s18  ;;  %p58_p0 = scmp.ne.s32.totalorder %s927_s14, %s923_s13 }
   0xd   : > { %p49_p1 = scmp.eq.s32.totalorder %s48_s20, 0  ;;  %p59_p2 = scmp.eq.s32.totalorder %s931_s15, 0 }
   0xe   : > { %p64_p3 = scmp.ne.s32.totalorder %s923_s13, %s919_s12  ;;  %p65_p4 = scmp.eq.s32.totalorder %s979_s16, 0 }
   0xf   : > { %s995_s21 = scalar_select %p49_p1, %s927_s14, %s51_s19  }
  0x10   : > { %p997_p5 = por %p59_p2, %p58_p0  ;;  %p1003_p6 = por %p65_p4, %p64_p3 }
  0x11   : > { %1343 = sst [smem:[#allocation14_spill]] %s995_s21  ;;  %p114_p7 = scmp.eq.s32.totalorder %s979_s16, 1 }
  0x12   : > { %p120_p8 = scmp.eq.s32.totalorder %s685_s17, 1  ;;  %p686_p9 = scmp.ge.s32.totalorder %s931_s15, 1 }
  0x13   : > { %p127_p10 = scmp.lt.s32.totalorder %s931_s15, 3  ;;  %p1010_p11 = por %p114_p7, %p58_p0 }
  0x14   : > { %p1014_p12 = por %p120_p8, %p64_p3  ;;  %s1349_s0 = sld [smem:[#allocation15_spill]] }
  0x15   : > { %p1018_p13 = pnand %p686_p9, %p127_p10  ;;  %p740_p2 = scmp.lt.s32.totalorder %s931_s15, 2 }
  0x16   : > { %s1032_s30 = sand.u32 1, %s927_s14   ;;  %s933_s6 = smov [#allocation2]  }
  0x17   : > { %p724_p1 = pneg %p1018_p13  ;;  %p1036_p3 = pnand %p740_p2, %p997_p5 }
  0x18   : > { %s1341_s5 = smul.u32 384, %s1032_s30  ;;  %s151_s20 = scalar_lea.sflag [#allocation3], %s1032_s30 }
  0x19   : > { %p725_p7 = pnand %p724_p1, %p65_p4  ;;  %s706_s7 = smul.u32 384, %s931_s15 }
  0x1a   : > { %s139_s29 = sshll.u32 %s1349_s0, 4  ;;  %s154_s8 = scalar_lea.vmem [#allocation6], %s1341_s5  ;;  %s140_s29 = int_to_ptr.hbm [resolvable:$true] %s139_s29 }
  0x1b   : > { %727 = dma.hbm_to_smem (!%p725_p7), %s140_s29, 16, %s933_s6, [#allocation5]  }
  0x1c   : > { %s163_s9 = sshll.u32 %s154_s8, 4  ;;  %s160_s17 = scalar_lea.hbm %s1338_s1, %s706_s7  ;;  %s164_s9 = int_to_ptr.vmem [resolvable:$true] %s163_s9 }
  0x1d   : > { %s161_s19 = sshll.u32 %s160_s17, 4  ;;  %p801_p8 = pneg %p1036_p3  ;;  %s162_s19 = int_to_ptr.hbm [resolvable:$true] %s161_s19 }
  0x1e   : > { %s797_s22 = sshra.s32 %s162_s19, 4  ;;  %s804_s6 = scalar_lea.hbm %s1338_s1, 768  ;;  %s798_s22 = int_to_ptr.hbm [resolvable:$true] %s797_s22 }
  0x1f   : > { %s799_s27 = scalar_lea.hbm %s798_s22, 384  ;;  %p805_p1 = scmp.lt.s32.totalorder %s798_s22, %s1338_s1 }
  0x20   : > { %p800_p5 = scmp.ne.s32.totalorder %s798_s22, %s799_s27  ;;  %p806_p2 = scmp.lt.s32.totalorder %s804_s6, %s799_s27 }
  0x22   : > { %p802_p9 = pnand %p801_p8, %p800_p5  ;;  %p807_p7 = por %p806_p2, %p805_p1 }
  0x24   : > { %p803_p10 = pneg %p802_p9 }
  0x26   : > { %p808_p0 = pnand %p807_p7, %p803_p10 }
  0x28   : > { %811 = shalt.err (!%p808_p0)
}
  0x29   : > { %s934_s11 = smov 1024   ;;  %s935_s17 = smov 64  }
  0x2a   : > { %731 = dma.hbm_to_vmem [thread:$0]  (!%p1036_p3), %s162_s19, 6144, %s164_s9, %s151_s20, %s934_s11, %s934_s11, %s935_s17  }
  0x2b   : > { %s183_s28 = scalar_lea.hbm %s1339_s2, %s706_s7  ;;  %s1351_s29 = smul.u32 384, %s1032_s30 }
  0x2c   : > { %s184_s22 = sshll.u32 %s183_s28, 4  ;;  %s174_s27 = scalar_lea.sflag [#allocation8], %s1032_s30  ;;  %s185_s22 = int_to_ptr.hbm [resolvable:$true] %s184_s22 }
  0x2d   : > { %s177_s21 = scalar_lea.vmem [#allocation7], %s1351_s29  ;;  %s827_s6 = sshra.s32 %s185_s22, 4  ;;  %s828_s6 = int_to_ptr.hbm [resolvable:$true] %s827_s6 }
  0x2e   : > { %s186_s8 = sshll.u32 %s177_s21, 4  ;;  %s829_s10 = scalar_lea.hbm %s828_s6, 384  ;;  %s187_s8 = int_to_ptr.vmem [resolvable:$true] %s186_s8 }
  0x2f   : > { %p830_p0 = scmp.ne.s32.totalorder %s828_s6, %s829_s10  ;;  %s834_s0 = scalar_lea.hbm %s1339_s2, 768 }
  0x30   : > { %p835_p10 = scmp.lt.s32.totalorder %s828_s6, %s1339_s2  ;;  %p836_p1 = scmp.lt.s32.totalorder %s834_s0, %s829_s10 }
  0x31   : > { %p832_p5 = pnand %p830_p0, %p801_p8 }
  0x32   : > { %p837_p2 = por %p836_p1, %p835_p10 }
  0x33   : > { %p833_p9 = pneg %p832_p5 }
  0x35   : > { %p838_p7 = pnand %p837_p2, %p833_p9 }
  0x37   : > { %841 = shalt.err (!%p838_p7)
}
  0x38   : > { %734 = dma.hbm_to_vmem [thread:$0]  (!%p1036_p3), %s185_s22, 6144, %s187_s8, %s174_s27, %s934_s11, %s934_s11, %s935_s17  }
  0x39   : > { %198 = sbr.rel (%p1018_p13) target bundleno = 204 (0xcc), region = 32 }
  0x3e   : > { %902 = dma.done.wait (%p65_p4), [#allocation5], 16  }
  0x3f   : > { %904 = vsyncadd (%p65_p4), [#allocation5], 4294967280  ;;  %s1085_s21 = sand.u32 1, %s923_s13  }
  0x40   : > { %s1088_s30 = smul.u32 384, %s1085_s21  ;;  %s206_s4 = scalar_lea.sflag [#allocation3], %s1085_s21 }
  0x42   : > { %s1092_s20 = scalar_lea.vmem [#allocation6], %s1088_s30 }
  0x43   : > { %906 = dma.done.wait (%p1003_p6), %s206_s4, 6144  }
  0x44   : > { %908 = vsyncadd (%p1003_p6), %s206_s4, 4294961152  ;;  %s216_s26 = scalar_lea.sflag [#allocation8], %s1085_s21  ;;  %s1100_s11 = scalar_lea.vmem [#allocation7], %s1088_s30 }
  0x45   : > { %910 = dma.done.wait (%p1003_p6), %s216_s26, 6144  }
  0x46   : > { %912 = vsyncadd (%p1003_p6), %s216_s26, 4294961152 }
  0x47   : > { %225 = sfence }
  0x48   : > { %s695_s17 = sld [smem:[#allocation2 + $0x1]]  ;;  %v271_v11 = vld [vmem:[%s1092_s20] sm:$0xff]  ;;  %v272_v12 = vld [vmem:[%s1092_s20 + $0x8] sm:$0xff]  ;;  %v273_v13 = vld [vmem:[%s1092_s20 + $0x10] sm:$0xff]  ;;  %s1150_s8 = scalar_lea.vmem [#allocation9], %s1088_s30 }
  0x49   : > { %s252_s23 = sld [smem:[#allocation2]]  ;;  %v319_v14 = vld [vmem:[%s1100_s11] sm:$0xff]  ;;  %v320_v15 = vld [vmem:[%s1100_s11 + $0x8] sm:$0xff]  ;;  %v321_v16 = vld [vmem:[%s1100_s11 + $0x10] sm:$0xff]  ;;  %s708_s22 = smul.u32 384, %s979_s16 }
  0x4a   : > { %v274_v17 = vld [vmem:[%s1092_s20 + $0x18] sm:$0xff]  ;;  %v275_v19 = vld [vmem:[%s1092_s20 + $0x20] sm:$0xff]  ;;  %v276_v21 = vld [vmem:[%s1092_s20 + $0x28] sm:$0xff]  ;;  %v367_v23 = vsub.f32 %v271_v11, %v319_v14  ;;  %v368_v24 = vsub.f32 %v272_v12, %v320_v15  ;;  %v369_v25 = vsub.f32 %v273_v13, %v321_v16  ;;  %s574_s10 = sshll.u32 %s1150_s8, 4  ;;  %s561_s19 = scalar_lea.sflag [#allocation4], %s1085_s21  ;;  %s575_s10 = int_to_ptr.vmem [resolvable:$true] %s574_s10 }
  0x4b   : > { %v322_v18 = vld [vmem:[%s1100_s11 + $0x18] sm:$0xff]  ;;  %v323_v20 = vld [vmem:[%s1100_s11 + $0x20] sm:$0xff]  ;;  %v324_v22 = vld [vmem:[%s1100_s11 + $0x28] sm:$0xff]  ;;  %s573_s6 = scalar_lea.hbm %s1340_s3, %s708_s22  ;;  %s877_s4 = scalar_lea.hbm %s1340_s3, 768 }
  0x4c   : > { %v277_v26 = vld [vmem:[%s1092_s20 + $0x30] sm:$0xff]  ;;  %v370_v28 = vsub.f32 %v274_v17, %v322_v18  ;;  %v278_v30 = vld [vmem:[%s1092_s20 + $0x38] sm:$0xff]  ;;  %v371_v32 = vsub.f32 %v275_v19, %v323_v20  ;;  %v279_v33 = vld [vmem:[%s1092_s20 + $0x40] sm:$0xff]  ;;  %v372_v36 = vsub.f32 %v276_v21, %v324_v22  ;;  %s576_s9 = sshll.u32 %s573_s6, 4  ;;  %s577_s9 = int_to_ptr.hbm [resolvable:$true] %s576_s9 }
  0x4d   : > { %v325_v27 = vld [vmem:[%s1100_s11 + $0x30] sm:$0xff]  ;;  %v326_v31 = vld [vmem:[%s1100_s11 + $0x38] sm:$0xff]  ;;  %v280_v34 = vld [vmem:[%s1092_s20 + $0x48] sm:$0xff]  ;;  %s871_s0 = sshra.s32 %s577_s9, 4  ;;  %s872_s0 = int_to_ptr.hbm [resolvable:$true] %s871_s0 }
  0x4e   : > { %v254_v0 = vstv %s695_s17  ;;  %v327_v35 = vld [vmem:[%s1100_s11 + $0x40] sm:$0xff]  ;;  %v281_v37 = vld [vmem:[%s1092_s20 + $0x50] sm:$0xff]  ;;  %v328_v38 = vld [vmem:[%s1100_s11 + $0x48] sm:$0xff]  ;;  %v373_v40 = vsub.f32 %v277_v26, %v325_v27  ;;  %v374_v44 = vsub.f32 %v278_v30, %v326_v31  ;;  %s873_s5 = scalar_lea.hbm %s872_s0, 384  ;;  %p878_p3 = scmp.lt.s32.totalorder %s872_s0, %s1340_s3 }
  0x4f   : > { %780 = vrcp.f32 %v254_v0  ;;  %v266_v3 = vand.u32 2147483648, %v254_v0  ;;  %vm260_vm0 = vweird.f32 %v254_v0  ;;  %v264_v5 = vand.u32 2147483647, %v254_v0  ;;  %v329_v39 = vld [vmem:[%s1100_s11 + $0x50] sm:$0xff]  ;;  %v282_v46 = vld [vmem:[%s1092_s20 + $0x58] sm:$0xff]  ;;  %v283_v50 = vld [vmem:[%s1092_s20 + $0x60] sm:$0xff]  ;;  %p874_p4 = scmp.ne.s32.totalorder %s872_s0, %s873_s5  ;;  %p879_p8 = scmp.lt.s32.totalorder %s877_s4, %s873_s5 }
  0x50   : > { %v330_v47 = vld [vmem:[%s1100_s11 + $0x58] sm:$0xff]  ;;  %v375_v48 = vsub.f32 %v279_v33, %v327_v35  ;;  %v331_v51 = vld [vmem:[%s1100_s11 + $0x60] sm:$0xff]  ;;  %v376_v52 = vsub.f32 %v280_v34, %v328_v38  ;;  %v377_v53 = vsub.f32 %v281_v37, %v329_v39  ;;  %v284_v55 = vld [vmem:[%s1092_s20 + $0x68] sm:$0xff] }
  0x51   : > { %v267_v7 = vor.u32 1.1754944e-38, %v266_v3  ;;  %vm265_vm3 = vcmp.eq.f32.partialorder %v264_v5, 8.507059e+37  ;;  %v332_v56 = vld [vmem:[%s1100_s11 + $0x68] sm:$0xff]  ;;  %v285_v61 = vld [vmem:[%s1092_s20 + $0x70] sm:$0xff]  ;;  %v378_v63 = vsub.f32 %v282_v46, %v330_v47  ;;  %v334_v3 = vld [vmem:[%s1100_s11 + $0x78] sm:$0xff]  ;;  %p875_p6 = pnand %p874_p4, %p1010_p11  ;;  %p880_p0 = por %p879_p8, %p878_p3 }
  0x52   : > { %v333_v62 = vld [vmem:[%s1100_s11 + $0x70] sm:$0xff]  ;;  %v288_v12 = vld [vmem:[%s1092_s20 + $0x88] sm:$0xff]  ;;  %v290_v22 = vld [vmem:[%s1092_s20 + $0x98] sm:$0xff] }
  0x53   : > { %v336_v13 = vld [vmem:[%s1100_s11 + $0x88] sm:$0xff]  ;;  %v381_v14 = vsub.f32 %v285_v61, %v333_v62  ;;  %v289_v17 = vld [vmem:[%s1092_s20 + $0x90] sm:$0xff]  ;;  %v291_v27 = vld [vmem:[%s1092_s20 + $0xa0] sm:$0xff]  ;;  %p876_p13 = pneg %p875_p6 }
  0x54   : > { %v337_v18 = vld [vmem:[%s1100_s11 + $0x90] sm:$0xff]  ;;  %v384_v30 = vsub.f32 %v288_v12, %v336_v13  ;;  %v292_v33 = vld [vmem:[%s1092_s20 + $0xa8] sm:$0xff] }
  0x55   : > { %v781_v1 = vpop.eup %780  ;;  %v340_v34 = vld [vmem:[%s1100_s11 + $0xa8] sm:$0xff]  ;;  %v385_v35 = vsub.f32 %v289_v17, %v337_v18  ;;  %v293_v38 = vld [vmem:[%s1092_s20 + $0xb0] sm:$0xff]  ;;  %p881_p5 = pnand %p880_p0, %p876_p13 }
  0x56   : > { %v256_v2 = vmul.f32 %v781_v1, %v254_v0  ;;  %vm261_vm1 = vweird.f32 %v781_v1  ;;  %v341_v39 = vld [vmem:[%s1100_s11 + $0xb0] sm:$0xff] }
  0x57   : > { %vm262_vm2 = vmor %vm260_vm0, %vm261_vm1 }
  0x58   : > { %v257_v4 = vsub.f32 1.0, %v256_v2  ;;  %v286_v2 = vld [vmem:[%s1092_s20 + $0x78] sm:$0xff] }
  0x59   : > { %v382_v19 = vsub.f32 %v286_v2, %v334_v3 }
  0x5a   : > { %v258_v6 = vmul.f32 %v781_v1, %v257_v4  ;;  %v379_v4 = vsub.f32 %v283_v50, %v331_v51  ;;  %v388_v50 = vsub.f32 %v292_v33, %v340_v34 }
  0x5c   : > { %v259_v8 = vadd.f32 %v781_v1, %v258_v6 }
  0x5e   : > { %v263_v9 = vsel %vm262_vm2, %v781_v1, %v259_v8  ;;  %v335_v8 = vld [vmem:[%s1100_s11 + $0x80] sm:$0xff] }
  0x5f   : > { %v268_v10 = vsel %vm265_vm3, %v267_v7, %v263_v9  ;;  %v287_v7 = vld [vmem:[%s1092_s20 + $0x80] sm:$0xff]  ;;  %v380_v9 = vsub.f32 %v284_v55, %v332_v56  ;;  %v389_v55 = vsub.f32 %v293_v38, %v341_v39 }
  0x60   : > { %712 = vpush %v268_v10 }
  0x91   : > { %s713_s28 = spop %712 }
  0x92   : > { %s270_s29 = smul.f32 %s713_s28, %s252_s23 }
  0x94   : > { %v1120_v29 = vstv %s270_s29 }
  0x95   : > { %v416_v41 = vadd.f32 %v1120_v29, %v367_v23  ;;  %v417_v42 = vadd.f32 %v1120_v29, %v368_v24  ;;  %v418_v43 = vadd.f32 %v1120_v29, %v369_v25  ;;  %v419_v45 = vadd.f32 %v1120_v29, %v370_v28  ;;  %v338_v23 = vld [vmem:[%s1100_s11 + $0x98] sm:$0xff]  ;;  %v339_v28 = vld [vmem:[%s1100_s11 + $0xa0] sm:$0xff] }
  0x96   : > { %v420_v49 = vadd.f32 %v1120_v29, %v371_v32  ;;  %v421_v54 = vadd.f32 %v1120_v29, %v372_v36  ;;  %v422_v57 = vadd.f32 %v1120_v29, %v373_v40  ;;  %v423_v0 = vadd.f32 %v1120_v29, %v374_v44  ;;  %v342_v44 = vld [vmem:[%s1100_s11 + $0xb8] sm:$0xff] }
  0x97   : > { %v464_v58 = vmax.f32 %v416_v41, 0.0  ;;  %v465_v59 = vmax.f32 %v417_v42, 0.0  ;;  %v466_v60 = vmax.f32 %v418_v43, 0.0  ;;  %v467_v1 = vmax.f32 %v419_v45, 0.0  ;;  %v294_v43 = vld [vmem:[%s1092_s20 + $0xb8] sm:$0xff] }
  0x98   : > { %v424_v5 = vadd.f32 %v1120_v29, %v375_v48  ;;  %v468_v6 = vmax.f32 %v420_v49, 0.0  ;;  %v425_v10 = vadd.f32 %v1120_v29, %v376_v52  ;;  %v469_v11 = vmax.f32 %v421_v54, 0.0  ;;  %v295_v48 = vld [vmem:[%s1092_s20 + $0xc0] sm:$0xff]  ;;  %v344_v54 = vld [vmem:[%s1100_s11 + $0xc8] sm:$0xff] }
  0x99   : > { %512 = vst [vmem:[%s1150_s8] sm:$0xff] %v464_v58  ;;  %v426_v15 = vadd.f32 %v1120_v29, %v377_v53  ;;  %v470_v16 = vmax.f32 %v422_v57, 0.0  ;;  %v427_v20 = vadd.f32 %v1120_v29, %v378_v63  ;;  %v471_v21 = vmax.f32 %v423_v0, 0.0  ;;  %v343_v49 = vld [vmem:[%s1100_s11 + $0xc0] sm:$0xff]  ;;  %v296_v53 = vld [vmem:[%s1092_s20 + $0xc8] sm:$0xff]  ;;  %v297_v58 = vld [vmem:[%s1092_s20 + $0xd0] sm:$0xff] }
  0x9a   : > { %513 = vst [vmem:[%s1150_s8 + $0x8] sm:$0xff] %v465_v59  ;;  %v383_v24 = vsub.f32 %v287_v7, %v335_v8  ;;  %v428_v25 = vadd.f32 %v1120_v29, %v379_v4  ;;  %v472_v26 = vmax.f32 %v424_v5, 0.0  ;;  %v429_v31 = vadd.f32 %v1120_v29, %v380_v9  ;;  %v345_v59 = vld [vmem:[%s1100_s11 + $0xd0] sm:$0xff]  ;;  %v298_v63 = vld [vmem:[%s1092_s20 + $0xd8] sm:$0xff]  ;;  %v299_v4 = vld [vmem:[%s1092_s20 + $0xe0] sm:$0xff] }
  0x9b   : > { %514 = vst [vmem:[%s1150_s8 + $0x10] sm:$0xff] %v466_v60  ;;  %v473_v32 = vmax.f32 %v425_v10, 0.0  ;;  %v430_v36 = vadd.f32 %v1120_v29, %v381_v14  ;;  %v474_v37 = vmax.f32 %v426_v15, 0.0  ;;  %v386_v40 = vsub.f32 %v290_v22, %v338_v23  ;;  %v346_v0 = vld [vmem:[%s1100_s11 + $0xd8] sm:$0xff]  ;;  %v347_v5 = vld [vmem:[%s1100_s11 + $0xe0] sm:$0xff]  ;;  %v300_v9 = vld [vmem:[%s1092_s20 + $0xe8] sm:$0xff] }
  0x9c   : > { %515 = vst [vmem:[%s1150_s8 + $0x18] sm:$0xff] %v467_v1  ;;  %v431_v41 = vadd.f32 %v1120_v29, %v382_v19  ;;  %v475_v42 = vmax.f32 %v427_v20, 0.0  ;;  %v387_v45 = vsub.f32 %v291_v27, %v339_v28  ;;  %v432_v46 = vadd.f32 %v1120_v29, %v383_v24  ;;  %v348_v10 = vld [vmem:[%s1100_s11 + $0xe8] sm:$0xff]  ;;  %v301_v14 = vld [vmem:[%s1092_s20 + $0xf0] sm:$0xff]  ;;  %v302_v19 = vld [vmem:[%s1092_s20 + $0xf8] sm:$0xff] }
  0x9d   : > { %516 = vst [vmem:[%s1150_s8 + $0x20] sm:$0xff] %v468_v6  ;;  %v476_v47 = vmax.f32 %v428_v25, 0.0  ;;  %v433_v51 = vadd.f32 %v1120_v29, %v384_v30  ;;  %v477_v52 = vmax.f32 %v429_v31, 0.0  ;;  %v434_v56 = vadd.f32 %v1120_v29, %v385_v35  ;;  %v349_v15 = vld [vmem:[%s1100_s11 + $0xf0] sm:$0xff]  ;;  %v350_v20 = vld [vmem:[%s1100_s11 + $0xf8] sm:$0xff]  ;;  %v303_v24 = vld [vmem:[%s1092_s20 + $0x100] sm:$0xff] }
  0x9e   : > { %517 = vst [vmem:[%s1150_s8 + $0x28] sm:$0xff] %v469_v11  ;;  %v478_v57 = vmax.f32 %v430_v36, 0.0  ;;  %v390_v60 = vsub.f32 %v294_v43, %v342_v44  ;;  %v435_v61 = vadd.f32 %v1120_v29, %v386_v40  ;;  %v479_v62 = vmax.f32 %v431_v41, 0.0  ;;  %v351_v25 = vld [vmem:[%s1100_s11 + $0x100] sm:$0xff]  ;;  %v304_v30 = vld [vmem:[%s1092_s20 + $0x108] sm:$0xff]  ;;  %v305_v35 = vld [vmem:[%s1092_s20 + $0x110] sm:$0xff] }
  0x9f   : > { %518 = vst [vmem:[%s1150_s8 + $0x30] sm:$0xff] %v470_v16  ;;  %v391_v1 = vsub.f32 %v295_v48, %v343_v49  ;;  %v436_v2 = vadd.f32 %v1120_v29, %v387_v45  ;;  %v480_v3 = vmax.f32 %v432_v46, 0.0  ;;  %v392_v6 = vsub.f32 %v296_v53, %v344_v54  ;;  %v352_v31 = vld [vmem:[%s1100_s11 + $0x108] sm:$0xff]  ;;  %v353_v36 = vld [vmem:[%s1100_s11 + $0x110] sm:$0xff]  ;;  %v306_v40 = vld [vmem:[%s1092_s20 + $0x118] sm:$0xff] }
  0xa0   : > { %519 = vst [vmem:[%s1150_s8 + $0x38] sm:$0xff] %v471_v21  ;;  %v437_v7 = vadd.f32 %v1120_v29, %v388_v50  ;;  %v481_v8 = vmax.f32 %v433_v51, 0.0  ;;  %v393_v11 = vsub.f32 %v297_v58, %v345_v59  ;;  %v438_v12 = vadd.f32 %v1120_v29, %v389_v55  ;;  %v354_v41 = vld [vmem:[%s1100_s11 + $0x118] sm:$0xff]  ;;  %v307_v45 = vld [vmem:[%s1092_s20 + $0x120] sm:$0xff]  ;;  %v308_v50 = vld [vmem:[%s1092_s20 + $0x128] sm:$0xff] }
  0xa1   : > { %520 = vst [vmem:[%s1150_s8 + $0x40] sm:$0xff] %v472_v26  ;;  %v482_v13 = vmax.f32 %v434_v56, 0.0  ;;  %v394_v16 = vsub.f32 %v298_v63, %v346_v0  ;;  %v439_v17 = vadd.f32 %v1120_v29, %v390_v60  ;;  %v483_v18 = vmax.f32 %v435_v61, 0.0  ;;  %v355_v46 = vld [vmem:[%s1100_s11 + $0x120] sm:$0xff]  ;;  %v356_v51 = vld [vmem:[%s1100_s11 + $0x128] sm:$0xff]  ;;  %v309_v55 = vld [vmem:[%s1092_s20 + $0x130] sm:$0xff] }
  0xa2   : > { %521 = vst [vmem:[%s1150_s8 + $0x48] sm:$0xff] %v473_v32  ;;  %v395_v21 = vsub.f32 %v299_v4, %v347_v5  ;;  %v440_v22 = vadd.f32 %v1120_v29, %v391_v1  ;;  %v484_v23 = vmax.f32 %v436_v2, 0.0  ;;  %v396_v26 = vsub.f32 %v300_v9, %v348_v10  ;;  %v357_v56 = vld [vmem:[%s1100_s11 + $0x130] sm:$0xff]  ;;  %v310_v60 = vld [vmem:[%s1092_s20 + $0x138] sm:$0xff]  ;;  %v311_v1 = vld [vmem:[%s1092_s20 + $0x140] sm:$0xff] }
  0xa3   : > { %522 = vst [vmem:[%s1150_s8 + $0x50] sm:$0xff] %v474_v37  ;;  %v441_v27 = vadd.f32 %v1120_v29, %v392_v6  ;;  %v485_v28 = vmax.f32 %v437_v7, 0.0  ;;  %v397_v32 = vsub.f32 %v301_v14, %v349_v15  ;;  %v442_v33 = vadd.f32 %v1120_v29, %v393_v11  ;;  %v358_v61 = vld [vmem:[%s1100_s11 + $0x138] sm:$0xff]  ;;  %v359_v2 = vld [vmem:[%s1100_s11 + $0x140] sm:$0xff]  ;;  %v312_v6 = vld [vmem:[%s1092_s20 + $0x148] sm:$0xff] }
  0xa4   : > { %523 = vst [vmem:[%s1150_s8 + $0x58] sm:$0xff] %v475_v42  ;;  %v486_v34 = vmax.f32 %v438_v12, 0.0  ;;  %v398_v37 = vsub.f32 %v302_v19, %v350_v20  ;;  %v443_v38 = vadd.f32 %v1120_v29, %v394_v16  ;;  %v487_v39 = vmax.f32 %v439_v17, 0.0  ;;  %v360_v7 = vld [vmem:[%s1100_s11 + $0x148] sm:$0xff]  ;;  %v313_v11 = vld [vmem:[%s1092_s20 + $0x150] sm:$0xff]  ;;  %v314_v16 = vld [vmem:[%s1092_s20 + $0x158] sm:$0xff] }
  0xa5   : > { %524 = vst [vmem:[%s1150_s8 + $0x60] sm:$0xff] %v476_v47  ;;  %v399_v42 = vsub.f32 %v303_v24, %v351_v25  ;;  %v444_v43 = vadd.f32 %v1120_v29, %v395_v21  ;;  %v488_v44 = vmax.f32 %v440_v22, 0.0  ;;  %v400_v47 = vsub.f32 %v304_v30, %v352_v31  ;;  %v361_v12 = vld [vmem:[%s1100_s11 + $0x150] sm:$0xff]  ;;  %v362_v17 = vld [vmem:[%s1100_s11 + $0x158] sm:$0xff]  ;;  %v315_v21 = vld [vmem:[%s1092_s20 + $0x160] sm:$0xff] }
  0xa6   : > { %525 = vst [vmem:[%s1150_s8 + $0x68] sm:$0xff] %v477_v52  ;;  %v445_v48 = vadd.f32 %v1120_v29, %v396_v26  ;;  %v489_v49 = vmax.f32 %v441_v27, 0.0  ;;  %v401_v52 = vsub.f32 %v305_v35, %v353_v36  ;;  %v446_v53 = vadd.f32 %v1120_v29, %v397_v32  ;;  %v363_v22 = vld [vmem:[%s1100_s11 + $0x160] sm:$0xff]  ;;  %v316_v26 = vld [vmem:[%s1092_s20 + $0x168] sm:$0xff]  ;;  %v317_v32 = vld [vmem:[%s1092_s20 + $0x170] sm:$0xff] }
  0xa7   : > { %526 = vst [vmem:[%s1150_s8 + $0x70] sm:$0xff] %v478_v57  ;;  %v490_v54 = vmax.f32 %v442_v33, 0.0  ;;  %v402_v57 = vsub.f32 %v306_v40, %v354_v41  ;;  %v447_v58 = vadd.f32 %v1120_v29, %v398_v37  ;;  %v491_v59 = vmax.f32 %v443_v38, 0.0  ;;  %v364_v27 = vld [vmem:[%s1100_s11 + $0x168] sm:$0xff]  ;;  %v365_v33 = vld [vmem:[%s1100_s11 + $0x170] sm:$0xff]  ;;  %v318_v37 = vld [vmem:[%s1092_s20 + $0x178] sm:$0xff] }
  0xa8   : > { %527 = vst [vmem:[%s1150_s8 + $0x78] sm:$0xff] %v479_v62  ;;  %v403_v62 = vsub.f32 %v307_v45, %v355_v46  ;;  %v448_v63 = vadd.f32 %v1120_v29, %v399_v42  ;;  %v492_v0 = vmax.f32 %v444_v43, 0.0  ;;  %v449_v4 = vadd.f32 %v1120_v29, %v400_v47  ;;  %v366_v38 = vld [vmem:[%s1100_s11 + $0x178] sm:$0xff] }
  0xa9   : > { %528 = vst [vmem:[%s1150_s8 + $0x80] sm:$0xff] %v480_v3  ;;  %v404_v3 = vsub.f32 %v308_v50, %v356_v51  ;;  %v493_v5 = vmax.f32 %v445_v48, 0.0  ;;  %v450_v9 = vadd.f32 %v1120_v29, %v401_v52  ;;  %v494_v10 = vmax.f32 %v446_v53, 0.0 }
  0xaa   : > { %529 = vst [vmem:[%s1150_s8 + $0x88] sm:$0xff] %v481_v8  ;;  %v405_v8 = vsub.f32 %v309_v55, %v357_v56  ;;  %v451_v14 = vadd.f32 %v1120_v29, %v402_v57  ;;  %v495_v15 = vmax.f32 %v447_v58, 0.0  ;;  %v452_v19 = vadd.f32 %v1120_v29, %v403_v62 }
  0xab   : > { %530 = vst [vmem:[%s1150_s8 + $0x90] sm:$0xff] %v482_v13  ;;  %v406_v13 = vsub.f32 %v310_v60, %v358_v61  ;;  %v496_v20 = vmax.f32 %v448_v63, 0.0  ;;  %v453_v24 = vadd.f32 %v1120_v29, %v404_v3  ;;  %v497_v25 = vmax.f32 %v449_v4, 0.0 }
  0xac   : > { %531 = vst [vmem:[%s1150_s8 + $0x98] sm:$0xff] %v483_v18  ;;  %v407_v18 = vsub.f32 %v311_v1, %v359_v2  ;;  %v454_v30 = vadd.f32 %v1120_v29, %v405_v8  ;;  %v498_v31 = vmax.f32 %v450_v9, 0.0  ;;  %v499_v36 = vmax.f32 %v451_v14, 0.0 }
  0xad   : > { %532 = vst [vmem:[%s1150_s8 + $0xa0] sm:$0xff] %v484_v23  ;;  %v408_v23 = vsub.f32 %v312_v6, %v360_v7  ;;  %v455_v35 = vadd.f32 %v1120_v29, %v406_v13  ;;  %v500_v41 = vmax.f32 %v452_v19, 0.0  ;;  %v412_v42 = vsub.f32 %v316_v26, %v364_v27 }
  0xae   : > { %533 = vst [vmem:[%s1150_s8 + $0xa8] sm:$0xff] %v485_v28  ;;  %v409_v28 = vsub.f32 %v313_v11, %v361_v12  ;;  %v456_v40 = vadd.f32 %v1120_v29, %v407_v18  ;;  %v413_v45 = vsub.f32 %v317_v32, %v365_v33  ;;  %v502_v47 = vmax.f32 %v454_v30, 0.0 }
  0xaf   : > { %534 = vst [vmem:[%s1150_s8 + $0xb0] sm:$0xff] %v486_v34  ;;  %v410_v34 = vsub.f32 %v314_v16, %v362_v17  ;;  %v457_v43 = vadd.f32 %v1120_v29, %v408_v23  ;;  %v414_v48 = vsub.f32 %v318_v37, %v366_v38  ;;  %v503_v50 = vmax.f32 %v455_v35, 0.0 }
  0xb0   : > { %535 = vst [vmem:[%s1150_s8 + $0xb8] sm:$0xff] %v487_v39  ;;  %v411_v39 = vsub.f32 %v315_v21, %v363_v22  ;;  %v458_v46 = vadd.f32 %v1120_v29, %v409_v28  ;;  %v504_v52 = vmax.f32 %v456_v40, 0.0  ;;  %v461_v53 = vadd.f32 %v1120_v29, %v412_v42 }
  0xb1   : > { %536 = vst [vmem:[%s1150_s8 + $0xc0] sm:$0xff] %v488_v44  ;;  %v501_v44 = vmax.f32 %v453_v24, 0.0  ;;  %v462_v55 = vadd.f32 %v1120_v29, %v413_v45  ;;  %v463_v57 = vadd.f32 %v1120_v29, %v414_v48 }
  0xb2   : > { %537 = vst [vmem:[%s1150_s8 + $0xc8] sm:$0xff] %v489_v49  ;;  %v459_v49 = vadd.f32 %v1120_v29, %v410_v34  ;;  %v460_v51 = vadd.f32 %v1120_v29, %v411_v39  ;;  %v506_v56 = vmax.f32 %v458_v46, 0.0  ;;  %v509_v60 = vmax.f32 %v461_v53, 0.0 }
  0xb3   : > { %538 = vst [vmem:[%s1150_s8 + $0xd0] sm:$0xff] %v490_v54  ;;  %v505_v54 = vmax.f32 %v457_v43, 0.0  ;;  %v510_v61 = vmax.f32 %v462_v55, 0.0  ;;  %v511_v62 = vmax.f32 %v463_v57, 0.0 }
  0xb4   : > { %539 = vst [vmem:[%s1150_s8 + $0xd8] sm:$0xff] %v491_v59  ;;  %v507_v58 = vmax.f32 %v459_v49, 0.0  ;;  %v508_v59 = vmax.f32 %v460_v51, 0.0 }
  0xb5   : > { %540 = vst [vmem:[%s1150_s8 + $0xe0] sm:$0xff] %v492_v0 }
  0xb6   : > { %541 = vst [vmem:[%s1150_s8 + $0xe8] sm:$0xff] %v493_v5 }
  0xb7   : > { %542 = vst [vmem:[%s1150_s8 + $0xf0] sm:$0xff] %v494_v10 }
  0xb8   : > { %543 = vst [vmem:[%s1150_s8 + $0xf8] sm:$0xff] %v495_v15 }
  0xb9   : > { %544 = vst [vmem:[%s1150_s8 + $0x100] sm:$0xff] %v496_v20 }
  0xba   : > { %545 = vst [vmem:[%s1150_s8 + $0x108] sm:$0xff] %v497_v25 }
  0xbb   : > { %546 = vst [vmem:[%s1150_s8 + $0x110] sm:$0xff] %v498_v31 }
  0xbc   : > { %547 = vst [vmem:[%s1150_s8 + $0x118] sm:$0xff] %v499_v36 }
  0xbd   : > { %548 = vst [vmem:[%s1150_s8 + $0x120] sm:$0xff] %v500_v41 }
  0xbe   : > { %549 = vst [vmem:[%s1150_s8 + $0x128] sm:$0xff] %v501_v44 }
  0xbf   : > { %550 = vst [vmem:[%s1150_s8 + $0x130] sm:$0xff] %v502_v47 }
  0xc0   : > { %551 = vst [vmem:[%s1150_s8 + $0x138] sm:$0xff] %v503_v50 }
  0xc1   : > { %552 = vst [vmem:[%s1150_s8 + $0x140] sm:$0xff] %v504_v52 }
  0xc2   : > { %553 = vst [vmem:[%s1150_s8 + $0x148] sm:$0xff] %v505_v54 }
  0xc3   : > { %554 = vst [vmem:[%s1150_s8 + $0x150] sm:$0xff] %v506_v56 }
  0xc4   : > { %555 = vst [vmem:[%s1150_s8 + $0x158] sm:$0xff] %v507_v58 }
  0xc5   : > { %556 = vst [vmem:[%s1150_s8 + $0x160] sm:$0xff] %v508_v59 }
  0xc6   : > { %557 = vst [vmem:[%s1150_s8 + $0x168] sm:$0xff] %v509_v60 }
  0xc7   : > { %558 = vst [vmem:[%s1150_s8 + $0x170] sm:$0xff] %v510_v61 }
  0xc8   : > { %559 = vst [vmem:[%s1150_s8 + $0x178] sm:$0xff] %v511_v62 }
  0xc9   : > { %884 = shalt.err (!%p881_p5)
}
  0xca   : > { %s936_s21 = smov 1024   ;;  %s937_s11 = smov 64  }
  0xcb   : > { %722 = dma.vmem_to_hbm [thread:$0]  (%p1010_p11), %s575_s10, 6144, %s577_s9, %s561_s19, %s936_s21, %s936_s21, %s937_s11  }
  0xcc PF: > { %s591_s17 = sand.u32 1, %s919_s12   ;;  %p1352_p9 = scmp.ge.s32.totalorder %s931_s15, 2 }
  0xcd   : > { %s592_s23 = scalar_lea.sflag [#allocation4], %s591_s17 }
  0xce   : > { %p736_p10 = pnand %p1352_p9, %p1014_p12 }
  0xd0   : > { %p737_p1 = pneg %p736_p10 }
  0xd2   : > { %914 = dma.done.wait (%p737_p1), %s592_s23, 6144  }
  0xd3   : > { %916 = vsyncadd (%p737_p1), %s592_s23, 4294961152  ;;  %s1353_s28 = sld [smem:[#allocation14_spill]]  ;;  %p20_p2 = scmp.ge.s32.totalorder %s983_s18, 4  }
  0xd4   : > { %s1354_s12 = smov %s923_s13  ;;  %s1355_s13 = smov %s927_s14 }
  0xd5   : > { %s1357_s15 = smov %s983_s18  ;;  %22 = sbr.rel (!%p20_p2) target bundleno = 10 (0xa), region = 95 }
  0xd9   : > { %s1356_s14 = smov %s1353_s28 }
  0xda   :  { %598 = vsyncpa [#allocation3], 1 }
  0xdb   :  { %600 = vsyncpa [#allocation3 + $0x1], 1 }
  0xdc   :  { %601 = vsyncpa [#allocation8], 1 }
  0xdd   :  { %603 = vsyncpa [#allocation8 + $0x1], 1 }
  0xde   :  { %604 = vsyncpa [#allocation4], 1 }
  0xdf   :  { %606 = vsyncpa [#allocation4 + $0x1], 1 }
  0xe0   :  { %607 = vsyncpa [#allocation5], 1 }
  0xe1   :  { %609 = vsyncpa [#allocation5 + $0x1], 1 }

</bundles_post_ra>
